<compile_context>
chip_gen: v6e
topology: v6e:2x2x1
jax: 0.10.0
libtpu: 0.0.40
codegen_flags: <defaults>
</compile_context>

<pallas_src>
import numpy as np
import jax
import jax.numpy as jnp
from jax.experimental import pallas as pl
from jax.experimental.pallas import tpu as pltpu

_EPS = 1e-4
_LOG_EPS = float(np.log(_EPS))          # log(1e-4)
_LOG_1M_EPS = float(np.log1p(-_EPS))    # log(1 - 1e-4)


def _round_up(x, m):
    return ((x + m - 1) // m) * m


def _cdiv(a, b):
    return (a + b - 1) // b


# ----------------------------------------------------------------------------
# Kernel: modified focal loss over the class heatmap (hot path).
#   - fuses the _sigmoid (sigmoid + clamp) into the kernel
#   - handles ragged (rows, hw) edges in-kernel (no jnp.pad copies)
#   - emits one (8,128) partial block per tile: rows 0/1/2 = pos / neg / npos
# ----------------------------------------------------------------------------
def _make_focal_kernel(rows, hw, tile_r, tile_hw):
    mask_rows = (rows % tile_r) != 0
    mask_cols = (hw % tile_hw) != 0

    def kernel(x_ref, g_ref, out_ref):
        x = x_ref[...].astype(jnp.float32)
        gt = g_ref[...].astype(jnp.float32)

        # validity mask for the ragged edge (out-of-bounds VMEM is undefined)
        valid = None
        if mask_rows:
            r0 = pl.program_id(0) * tile_r
            rid = r0 + jax.lax.broadcasted_iota(jnp.int32, (tile_r, tile_hw), 0)
            valid = rid < rows
        if mask_cols:
            c0 = pl.program_id(1) * tile_hw
            cid = c0 + jax.lax.broadcasted_iota(jnp.int32, (tile_r, tile_hw), 1)
            cmask = cid < hw
            valid = cmask if valid is None else jnp.logical_and(valid, cmask)

        # _sigmoid: clamp(sigmoid(x), 1e-4, 1-1e-4); sigmoid via one tanh (EUP)
        pred = jnp.clip(0.5 * jnp.tanh(0.5 * x) + 0.5, _EPS, 1.0 - _EPS)
        log_p = jnp.log(pred)
        # log(1 - sigmoid(x)) == log(sigmoid(x)) - x ; re-clamp so it matches
        # torch's clamp-before-log for |x| > ~9.2 (saves one log per element).
        log_1mp = jnp.clip(log_p - x, _LOG_EPS, _LOG_1M_EPS)

        pos_c = gt == 1.0
        neg_c = gt < 1.0
        if valid is not None:
            pos_c = jnp.logical_and(pos_c, valid)
            neg_c = jnp.logical_and(neg_c, valid)

        # selects (not multiply-by-zero): garbage edge data may be NaN/Inf
        pos_loss = jnp.where(pos_c, log_p * (1.0 - pred) ** 2, 0.0)
        neg_loss = jnp.where(neg_c, log_1mp * pred * pred * (1.0 - gt) ** 4, 0.0)
        n_pos = jnp.where(pos_c, 1.0, 0.0)

        # single lane-dense (8,128) partial block per tile:
        #   sublane 0 = pos sum, 1 = neg sum, 2 = num_pos, 3..7 = 0
        row = jax.lax.broadcasted_iota(jnp.int32, out_ref.shape, 0)
        out_ref[...] = jnp.where(
            row == 0, pos_loss.sum(),
            jnp.where(row == 1, neg_loss.sum(),
                      jnp.where(row == 2, n_pos.sum(), 0.0)))

    return kernel


def _pick_tiles(rows, hw, x_dtype, g_dtype):
    isz_min = min(jnp.dtype(x_dtype).itemsize, jnp.dtype(g_dtype).itemsize)
    isz_max = max(jnp.dtype(x_dtype).itemsize, jnp.dtype(g_dtype).itemsize)
    # dtype-aware sublane multiple: f32 -> 8, bf16 -> 16, int8/fp8 -> 32
    sub = {4: 8, 2: 16, 1: 32}.get(isz_min, 8)

    # generation-aware per-input tile budget (2 inputs x 2 pipeline buffers)
    try:
        vmem = int(pltpu.get_tpu_info().vmem_capacity_bytes)
    except Exception:
        vmem = 64 * 1024 * 1024
    target = (2 if vmem <= 64 * 1024 * 1024 else 4) * 1024 * 1024

    hw128 = _round_up(hw, 128)
    rows_s = _round_up(rows, sub)
    if sub * hw128 * isz_max <= target:
        tile_hw = hw128
        tile_r = min(rows_s,
                     max(sub, (target // (tile_hw * isz_max)) // sub * sub))
    else:
        tile_r = sub
        tile_hw = min(hw128,
                      max(128, (target // (tile_r * isz_max)) // 128 * 128))

    # guarantee >= 2 "parallel" blocks so both v7x TensorCores get work
    if _cdiv(rows, tile_r) * _cdiv(hw, tile_hw) < 2:
        if rows_s >= 2 * sub:
            tile_r = max(sub, _round_up(rows_s // 2, sub))
        elif hw128 >= 2 * 128:
            tile_hw = max(128, _round_up(hw128 // 2, 128))
    return tile_r, tile_hw


def focal_loss_pallas(logits_nchw, gt_hm_nchw):
    B, C, H, W = logits_nchw.shape
    rows, hw = B * C, H * W

    # native-dtype streaming (bf16 halves HBM traffic); upcast happens in-kernel
    x2d = logits_nchw.reshape(rows, hw)
    g2d = gt_hm_nchw.reshape(rows, hw)

    tile_r, tile_hw = _pick_tiles(rows, hw, x2d.dtype, g2d.dtype)
    n_rt, n_ht = _cdiv(rows, tile_r), _cdiv(hw, tile_hw)
    out_rows, out_cols = n_rt * 8, n_ht * 128

    n_elem = rows * hw
    bytes_accessed = int(x2d.size * x2d.dtype.itemsize
                         + g2d.size * g2d.dtype.itemsize
                         + out_rows * out_cols * 4)

    partials = pl.pallas_call(
        _make_focal_kernel(rows, hw, tile_r, tile_hw),
        out_shape=jax.ShapeDtypeStruct((out_rows, out_cols), jnp.float32),
        grid_spec=pltpu.PrefetchScalarGridSpec(
            num_scalar_prefetch=0,
            grid=(n_rt, n_ht),
            in_specs=[pl.BlockSpec((tile_r, tile_hw), lambda i, j: (i, j)),
                      pl.BlockSpec((tile_r, tile_hw), lambda i, j: (i, j))],
            out_specs=pl.BlockSpec((8, 128), lambda i, j: (i, j)),
        ),
        compiler_params=pltpu.CompilerParams(
            dimension_semantics=("parallel", "parallel"),
            vmem_limit_bytes=32 * 1024 * 1024),
        cost_estimate=pl.CostEstimate(
            flops=int(14 * n_elem),
            transcendentals=int(2 * n_elem),
            bytes_accessed=bytes_accessed),
    )(x2d, g2d)

    # contiguous final reduce (each tile broadcast its partials across lanes)
    sums = partials.reshape(n_rt, 8, n_ht, 128).sum(axis=(0, 2, 3)) * (1.0 / 128.0)
    pos_sum, neg_sum, num_pos = sums[0], sums[1], sums[2]
    return jnp.where(num_pos == 0.0,
                     -neg_sum,
                     -(pos_sum + neg_sum) / jnp.maximum(num_pos, 1.0))


# ----------------------------------------------------------------------------
# CenterLoss.forward equivalent (hot path in Pallas, glue in plain JAX)
# ----------------------------------------------------------------------------
def center_loss_forward(pred, gt, config):
    down_stride = config['down_stride']
    alpha = config['Loss']['alpha']
    beta = config['Loss']['beta']
    gamma = config['Loss']['gamma']

    pred_hm_logits = pred['hm']   # sigmoid + clamp is fused into the focal kernel
    pred_wh = pred['wh']
    pred_offset = pred['reg']
    imgs, gt_boxes, gt_classes, gt_hm, infos = gt
    gt_nonpad_mask = gt_classes > 0

    cls_loss = focal_loss_pallas(pred_hm_logits, gt_hm)

    B = imgs.shape[0]
    _, _, H, W = pred_wh.shape
    HW = H * W

    # One flat gather over the whole batch; ragged per-batch target assembly
    # stays host-side (shapes are data-dependent).
    idx_parts, wh_tgt_parts, off_tgt_parts = [], [], []
    num = 0
    for b in range(B):
        ct = jnp.asarray(infos[b]['ct'], jnp.float32)
        ct_int = ct.astype(jnp.int32)                 # .long() (coords >= 0)
        k = int(ct_int.shape[0])
        num += k
        lin = ct_int[:, 1] * W + ct_int[:, 0]         # y * W + x
        base = b * 2 * HW
        # per-batch flatten order is (2, K) row-major: [channel 0.., channel 1..]
        idx_parts.append(jnp.concatenate([base + lin, base + HW + lin]))

        boxes = gt_boxes[b][gt_nonpad_mask[b]]
        assert int(boxes.shape[0]) == k, (
            "infos[b]['ct'] must align 1:1 with gt_boxes[b][gt_classes[b] > 0]")
        wh_tgt_parts.append(
            jnp.concatenate([boxes[:, 2] - boxes[:, 0],
                             boxes[:, 3] - boxes[:, 1]]) / down_stride)
        off_tgt_parts.append((ct - ct_int.astype(jnp.float32)).T.reshape(-1))

    idx = jnp.concatenate(idx_parts)
    wh_pred_v = jnp.take(pred_wh.reshape(-1), idx).astype(jnp.float32)
    off_pred_v = jnp.take(pred_offset.reshape(-1), idx).astype(jnp.float32)
    wh_tgt_v = jnp.concatenate(wh_tgt_parts)
    off_tgt_v = jnp.concatenate(off_tgt_parts)

    # Tiny terms (hundreds of elements): plain JAX, fused by XLA with the
    # gather — a dedicated pallas_call here is launch/scatter-overhead bound.
    wh_loss = jnp.abs(wh_pred_v - wh_tgt_v).sum()
    offset_loss = jnp.abs(off_pred_v - off_tgt_v).sum()

    regr_loss = wh_loss * beta + offset_loss * gamma
    return cls_loss * alpha, regr_loss / (num + 1e-6)


# ----------------------------------------------------------------------------
# pure-JAX reference (same math as the PyTorch module) for a sanity check
# ----------------------------------------------------------------------------
def _ref_forward(pred, gt, config):
    down_stride = config['down_stride']
    alpha, beta, gamma = (config['Loss']['alpha'], config['Loss']['beta'],
                          config['Loss']['gamma'])
    imgs, gt_boxes, gt_classes, gt_hm, infos = gt
    p = jnp.clip(jax.nn.sigmoid(pred['hm'].astype(jnp.float32)), 1e-4, 1 - 1e-4)
    g = gt_hm.astype(jnp.float32)
    pos, neg = (g == 1.0).astype(jnp.float32), (g < 1.0).astype(jnp.float32)
    pos_l = (jnp.log(p) * (1 - p) ** 2 * pos).sum()
    neg_l = (jnp.log(1 - p) * p ** 2 * (1 - g) ** 4 * neg).sum()
    num_pos = pos.sum()
    cls_loss = jnp.where(num_pos == 0, -neg_l, -(pos_l + neg_l) / num_pos)
    wh_loss = off_loss = 0.0
    num = 0
    for b in range(imgs.shape[0]):
        ct = jnp.asarray(infos[b]['ct'], jnp.float32)
        ci = ct.astype(jnp.int32)
        num += int(ci.shape[0])
        pw = pred['wh'][b][:, ci[:, 1], ci[:, 0]].reshape(-1)
        po = pred['reg'][b][:, ci[:, 1], ci[:, 0]].reshape(-1)
        boxes = gt_boxes[b][gt_classes[b] > 0]
        wh = jnp.stack([boxes[:, 2] - boxes[:, 0],
                        boxes[:, 3] - boxes[:, 1]]).reshape(-1) / down_stride
        off = (ct - ci.astype(jnp.float32)).T.reshape(-1)
        wh_loss += jnp.abs(pw - wh).sum()
        off_loss += jnp.abs(po - off).sum()
    return cls_loss * alpha, (wh_loss * beta + off_loss * gamma) / (num + 1e-6)


if __name__ == "__main__":
    key = jax.random.PRNGKey(0)
    # C=5, W=15 deliberately misaligned (rows=10, hw=240) to exercise the
    # in-kernel edge-masking path that replaced the jnp.pad copies.
    B, C, H, W = 2, 5, 16, 15
    down_stride = 4
    config = {'down_stride': down_stride,
              'Loss': {'alpha': 1.0, 'beta': 0.1, 'gamma': 1.0}}
    ks = jax.random.split(key, 8)

    pred = {
        'hm':  jax.random.normal(ks[0], (B, C, H, W), jnp.float32),
        'wh':  jax.random.normal(ks[1], (B, 2, H, W), jnp.float32) * 2.0,
        'reg': jax.random.normal(ks[2], (B, 2, H, W), jnp.float32) * 0.1,
    }

    K, max_objs = 3, 4
    ct = jax.random.uniform(ks[3], (B, K, 2), jnp.float32, 0.0, 14.99)
    gt_classes = jnp.array([[1, 2, 3, 0], [2, 4, 5, 0]], jnp.int32)
    xy1 = jax.random.uniform(ks[4], (B, max_objs, 2), jnp.float32, 0.0, 30.0)
    whb = jax.random.uniform(ks[5], (B, max_objs, 2), jnp.float32, 2.0, 30.0)
    gt_boxes = jnp.concatenate([xy1, xy1 + whb], axis=-1)

    gt_hm = jax.random.uniform(ks[6], (B, C, H, W), jnp.float32, 0.0, 0.9)
    for b in range(B):
        for k in range(K):
            cls = int(gt_classes[b, k]) - 1
            x, y = int(ct[b, k, 0]), int(ct[b, k, 1])
            gt_hm = gt_hm.at[b, cls, y, x].set(1.0)

    imgs = jax.random.normal(ks[7], (B, 3, H * down_stride, W * down_stride),
                             jnp.float32)
    infos = [{'ct': ct[b]} for b in range(B)]
    gt = (imgs, gt_boxes, gt_classes, gt_hm, infos)

    cls_loss, regr_loss = center_loss_forward(pred, gt, config)
    jax.block_until_ready((cls_loss, regr_loss))

    ref_cls, ref_regr = _ref_forward(pred, gt, config)
    np.testing.assert_allclose(np.asarray(cls_loss), np.asarray(ref_cls),
                               rtol=1e-3, atol=1e-3)
    np.testing.assert_allclose(np.asarray(regr_loss), np.asarray(ref_regr),
                               rtol=1e-3, atol=1e-3)
    print("KERNEL_OK")
</pallas_src>

<mosaic_0001>
module attributes {stable_mosaic.version = 11 : i64} {
  func.func @kernel(%arg0: i32, %arg1: i32, %arg2: memref<8x256xf32, #tpu.memory_space<vmem>>, %arg3: memref<8x256xf32, #tpu.memory_space<vmem>>, %arg4: memref<8x128xf32, #tpu.memory_space<vmem>>) attributes {dimension_semantics = [#tpu.dimension_semantics<parallel>, #tpu.dimension_semantics<parallel>], iteration_bounds = array<i64: 2, 1>, scalar_prefetch = 0 : i64, scratch_operands = 0 : i64, tpu.core_type = #tpu.core_type<tc>, window_params = [{transform_indices = @transform_0, window_bounds = array<i64: 8, 256>}, {transform_indices = @transform_1, window_bounds = array<i64: 8, 256>}, {transform_indices = @transform_2, window_bounds = array<i64: 8, 128>}]} {
    %c0 = arith.constant 0 : index
    %c0_0 = arith.constant 0 : index
    %0 = vector.load %arg2[%c0, %c0_0] : memref<8x256xf32, #tpu.memory_space<vmem>>, vector<8x256xf32>
    %c0_1 = arith.constant 0 : index
    %c0_2 = arith.constant 0 : index
    %1 = vector.load %arg3[%c0_1, %c0_2] : memref<8x256xf32, #tpu.memory_space<vmem>>, vector<8x256xf32>
    %c8_i32 = arith.constant 8 : i32
    %2 = arith.muli %arg0, %c8_i32 : i32
    %3 = tpu.iota {dimensions = array<i32: 0>} : vector<8x256xi32>
    %4 = vector.broadcast %2 : i32 to vector<8x256xi32>
    %5 = arith.addi %4, %3 : vector<8x256xi32>
    %c10_i32 = arith.constant 10 : i32
    %6 = vector.broadcast %c10_i32 : i32 to vector<8x256xi32>
    %7 = arith.cmpi slt, %5, %6 : vector<8x256xi32>
    %c256_i32 = arith.constant 256 : i32
    %8 = arith.muli %arg1, %c256_i32 : i32
    %9 = tpu.iota {dimensions = array<i32: 1>} : vector<8x256xi32>
    %10 = vector.broadcast %8 : i32 to vector<8x256xi32>
    %11 = arith.addi %10, %9 : vector<8x256xi32>
    %c240_i32 = arith.constant 240 : i32
    %12 = vector.broadcast %c240_i32 : i32 to vector<8x256xi32>
    %13 = arith.cmpi slt, %11, %12 : vector<8x256xi32>
    %14 = arith.andi %7, %13 : vector<8x256xi1>
    %cst = arith.constant 5.000000e-01 : f32
    %15 = vector.broadcast %cst : f32 to vector<8x256xf32>
    %16 = arith.mulf %15, %0 : vector<8x256xf32>
    %17 = math.tanh %16 : vector<8x256xf32>
    %cst_3 = arith.constant 5.000000e-01 : f32
    %18 = vector.broadcast %cst_3 : f32 to vector<8x256xf32>
    %19 = arith.mulf %18, %17 : vector<8x256xf32>
    %cst_4 = arith.constant 5.000000e-01 : f32
    %20 = vector.broadcast %cst_4 : f32 to vector<8x256xf32>
    %21 = arith.addf %19, %20 : vector<8x256xf32>
    %cst_5 = arith.constant 9.99999974E-5 : f32
    %cst_6 = arith.constant 0.999899983 : f32
    %22 = vector.broadcast %cst_5 : f32 to vector<8x256xf32>
    %23 = arith.maximumf %22, %21 : vector<8x256xf32>
    %24 = vector.broadcast %cst_6 : f32 to vector<8x256xf32>
    %25 = arith.minimumf %24, %23 : vector<8x256xf32>
    %26 = math.log %25 : vector<8x256xf32>
    %27 = arith.subf %26, %0 : vector<8x256xf32>
    %cst_7 = arith.constant -9.21034049 : f32
    %cst_8 = arith.constant -1.000050e-04 : f32
    %28 = vector.broadcast %cst_7 : f32 to vector<8x256xf32>
    %29 = arith.maximumf %28, %27 : vector<8x256xf32>
    %30 = vector.broadcast %cst_8 : f32 to vector<8x256xf32>
    %31 = arith.minimumf %30, %29 : vector<8x256xf32>
    %cst_9 = arith.constant 1.000000e+00 : f32
    %32 = vector.broadcast %cst_9 : f32 to vector<8x256xf32>
    %33 = arith.cmpf oeq, %1, %32 : vector<8x256xf32>
    %cst_10 = arith.constant 1.000000e+00 : f32
    %34 = vector.broadcast %cst_10 : f32 to vector<8x256xf32>
    %35 = arith.cmpf olt, %1, %34 : vector<8x256xf32>
    %36 = arith.andi %33, %14 : vector<8x256xi1>
    %37 = arith.andi %35, %14 : vector<8x256xi1>
    %cst_11 = arith.constant 1.000000e+00 : f32
    %38 = vector.broadcast %cst_11 : f32 to vector<8x256xf32>
    %39 = arith.subf %38, %25 : vector<8x256xf32>
    %40 = arith.mulf %39, %39 : vector<8x256xf32>
    %41 = arith.mulf %26, %40 : vector<8x256xf32>
    %cst_12 = arith.constant 0.000000e+00 : f32
    %42 = vector.broadcast %cst_12 : f32 to vector<8x256xf32>
    %43 = arith.select %36, %41, %42 : vector<8x256xi1>, vector<8x256xf32>
    %44 = arith.mulf %31, %25 : vector<8x256xf32>
    %45 = arith.mulf %44, %25 : vector<8x256xf32>
    %cst_13 = arith.constant 1.000000e+00 : f32
    %46 = vector.broadcast %cst_13 : f32 to vector<8x256xf32>
    %47 = arith.subf %46, %1 : vector<8x256xf32>
    %48 = arith.mulf %47, %47 : vector<8x256xf32>
    %49 = arith.mulf %48, %48 : vector<8x256xf32>
    %50 = arith.mulf %45, %49 : vector<8x256xf32>
    %cst_14 = arith.constant 0.000000e+00 : f32
    %51 = vector.broadcast %cst_14 : f32 to vector<8x256xf32>
    %52 = arith.select %37, %50, %51 : vector<8x256xi1>, vector<8x256xf32>
    %cst_15 = arith.constant 1.000000e+00 : f32
    %cst_16 = arith.constant 0.000000e+00 : f32
    %53 = vector.broadcast %cst_15 : f32 to vector<8x256xf32>
    %54 = vector.broadcast %cst_16 : f32 to vector<8x256xf32>
    %55 = arith.select %36, %53, %54 : vector<8x256xi1>, vector<8x256xf32>
    %56 = tpu.iota {dimensions = array<i32: 0>} : vector<8x128xi32>
    %c0_i32 = arith.constant 0 : i32
    %57 = vector.broadcast %c0_i32 : i32 to vector<8x128xi32>
    %58 = arith.cmpi eq, %56, %57 : vector<8x128xi32>
    %59 = vector.shape_cast %43 : vector<8x256xf32> to vector<1x8x256xf32>
    %cst_17 = arith.constant dense<0.000000e+00> : vector<1xf32>
    %60 = vector.multi_reduction <add>, %59, %cst_17 [1, 2] : vector<1x8x256xf32> to vector<1xf32>
    %61 = vector.shape_cast %60 : vector<1xf32> to vector<1x1x1xf32>
    %62 = vector.extract %61[0, 0, 0] : f32 from vector<1x1x1xf32>
    %c1_i32 = arith.constant 1 : i32
    %63 = vector.broadcast %c1_i32 : i32 to vector<8x128xi32>
    %64 = arith.cmpi eq, %56, %63 : vector<8x128xi32>
    %65 = vector.shape_cast %52 : vector<8x256xf32> to vector<1x8x256xf32>
    %cst_18 = arith.constant dense<0.000000e+00> : vector<1xf32>
    %66 = vector.multi_reduction <add>, %65, %cst_18 [1, 2] : vector<1x8x256xf32> to vector<1xf32>
    %67 = vector.shape_cast %66 : vector<1xf32> to vector<1x1x1xf32>
    %68 = vector.extract %67[0, 0, 0] : f32 from vector<1x1x1xf32>
    %c2_i32 = arith.constant 2 : i32
    %69 = vector.broadcast %c2_i32 : i32 to vector<8x128xi32>
    %70 = arith.cmpi eq, %56, %69 : vector<8x128xi32>
    %71 = vector.shape_cast %55 : vector<8x256xf32> to vector<1x8x256xf32>
    %cst_19 = arith.constant dense<0.000000e+00> : vector<1xf32>
    %72 = vector.multi_reduction <add>, %71, %cst_19 [1, 2] : vector<1x8x256xf32> to vector<1xf32>
    %73 = vector.shape_cast %72 : vector<1xf32> to vector<1x1x1xf32>
    %74 = vector.extract %73[0, 0, 0] : f32 from vector<1x1x1xf32>
    %cst_20 = arith.constant 0.000000e+00 : f32
    %75 = vector.broadcast %74 : f32 to vector<8x128xf32>
    %76 = vector.broadcast %cst_20 : f32 to vector<8x128xf32>
    %77 = arith.select %70, %75, %76 : vector<8x128xi1>, vector<8x128xf32>
    %78 = vector.broadcast %68 : f32 to vector<8x128xf32>
    %79 = arith.select %64, %78, %77 : vector<8x128xi1>, vector<8x128xf32>
    %80 = vector.broadcast %62 : f32 to vector<8x128xf32>
    %81 = arith.select %58, %80, %79 : vector<8x128xi1>, vector<8x128xf32>
    %c0_21 = arith.constant 0 : index
    %c0_22 = arith.constant 0 : index
    %82 = vector.load %arg4[%c0_21, %c0_22] : memref<8x128xf32, #tpu.memory_space<vmem>>, vector<8x128xf32>
    tpu.vector_store %arg4[%c0_21, %c0_22], %81 {strides = array<i32>} : memref<8x128xf32, #tpu.memory_space<vmem>>, vector<8x128xf32>,
    return
  }
  func.func @transform_0(%arg0: i32, %arg1: i32) -> (i32, i32) {
    %c0_i32 = arith.constant 0 : i32
    return %arg0, %arg1 : i32, i32
  }
  func.func @transform_1(%arg0: i32, %arg1: i32) -> (i32, i32) {
    %c0_i32 = arith.constant 0 : i32
    return %arg0, %arg1 : i32, i32
  }
  func.func @transform_2(%arg0: i32, %arg1: i32) -> (i32, i32) {
    %c0_i32 = arith.constant 0 : i32
    return %arg0, %arg1 : i32, i32
  }
}

</mosaic_0001>

<bundles_post_ra>
// kernel: tpu_custom_call.1
= control target key start
LH: loop header
LB: loop body
LE: loop exit
PB: predicated region body
PF: predicated region fallthrough
CT: control target
= control target key end

     0   :  { %7 = vsyncpa [#allocation3], 0  ;;  %s932_s0 = inlined_call_operand.hbm [shape: f32[10,240], index: 0, kind: input, shape index: {}]   ;;  %s933_s1 = inlined_call_operand.hbm [shape: f32[10,240], index: 1, kind: input, shape index: {}]   ;;  %s934_s2 = inlined_call_operand.hbm [shape: f32[16,128], index: 2, kind: output, shape index: {}]  }
   0x1   :  { %9 = vsyncpa [#allocation3 + $0x1], 0 }
   0x2   :  { %10 = vsyncpa [#allocation6], 0 }
   0x3   :  { %12 = vsyncpa [#allocation6 + $0x1], 0 }
   0x4   :  { %13 = vsyncpa [#allocation4], 0 }
   0x5   :  { %15 = vsyncpa [#allocation4 + $0x1], 0  ;;  %s724_s9 = smov 0   ;;  %s726_s10 = smov 0  }
   0x6   :  { %s728_s11 = smov 0   ;;  %s730_s12 = smov 0  }
   0x7   :  { %s732_s13 = smov 0   ;;  %s734_s14 = smov 0  }
   0x8 LB: > { %s460_s15 = sadd.s32 4294967295, %s703_s14   ;;  %s461_s16 = sadd.s32 4294967294, %s703_s14   ;;  %s703_s14 = sphi %s734_s14, %s21_s14   ;;  %s699_s13 = sphi %s732_s13, %s952_s13   ;;  %s695_s12 = sphi %s730_s12, %s951_s12   ;;  %s691_s11 = sphi %s728_s11, %s950_s11   ;;  %s687_s10 = sphi %s726_s10, %s949_s10   ;;  %s683_s9 = sphi %s724_s9, %s948_s9  }
   0x9   : > { %s33_s17 = sadd.s32 1, %s699_s13  ;;  %s42_s18 = sadd.s32 1, %s691_s11 }
   0xa   : > { %p35_p0 = scmp.ge.s32.totalorder %s33_s17, 2  ;;  %p49_p1 = scmp.ne.s32.totalorder %s691_s11, %s687_s10 }
   0xb   : > { %p50_p2 = scmp.eq.s32.totalorder %s703_s14, 0  ;;  %p55_p3 = scmp.ne.s32.totalorder %s687_s10, %s683_s9 }
   0xc   : > { %s954_s17 = smov (%p35_p0, %s33_s17), 0  ;;  %p56_p5 = scmp.eq.s32.totalorder %s460_s15, 0 }
   0xd   : > { %p765_p4 = por %p50_p2, %p49_p1  ;;  %s37_s20 = ssub.s32 %s699_s13, %s954_s17 }
   0xe   : > { %p109_p6 = scmp.eq.s32.totalorder %s460_s15, 1  ;;  %p40_p7 = scmp.eq.s32.totalorder %s37_s20, 0 }
   0xf   : > { %p771_p8 = por %p56_p5, %p55_p3  ;;  %p115_p10 = scmp.eq.s32.totalorder %s461_s16, 1 }
  0x10   : > { %p775_p9 = por %p109_p6, %p49_p1  ;;  %p504_p13 = scmp.lt.s32.totalorder %s703_s14, 2 }
  0x11   : > { %s780_s23 = scalar_select %p40_p7, %s691_s11, %s42_s18  }
  0x12   : > { %p782_p11 = por %p115_p10, %p55_p3  ;;  %s789_s25 = sand.u32 1, %s691_s11  }
  0x13   : > { %s464_s26 = sshll.u32 %s789_s25, 4  ;;  %s479_s27 = sshll.u32 %s699_s13, 8 }
  0x14   : > { %s147_s30 = scalar_lea.hbm %s932_s0, %s479_s27  ;;  %s139_s3 = scalar_lea.vmem [#allocation2], %s464_s26 }
  0x15   : > { %s149_s4 = sshll.u32 %s139_s3, 4  ;;  %p798_p0 = pnand %p504_p13, %p765_p4  ;;  %s150_s4 = int_to_ptr.vmem [resolvable:$true] %s149_s4 }
  0x16   : > { %p470_p1 = scmp.ge.s32.totalorder %s703_s14, 1  ;;  %p175_p2 = scmp.lt.s32.totalorder %s703_s14, 3 }
  0x17   : > { %s136_s6 = scalar_lea.sflag [#allocation3], %s789_s25  ;;  %p565_p3 = pneg %p798_p0 }
  0x18   : > { %s576_s7 = scalar_lea.vmem %s150_s4, 256  ;;  %s705_s8 = smov [#allocation2]  }
  0x19   : > { %p577_p5 = scmp.ne.s32.totalorder %s150_s4, %s576_s7  ;;  %s581_s15 = sshll.u32 %s705_s8, 4  ;;  %s582_s15 = int_to_ptr.vmem [resolvable:$false] %s581_s15 }
  0x1a   : > { %s583_s16 = scalar_lea.vmem %s582_s15, 512  ;;  %p584_p4 = scmp.lt.s32.totalorder %s150_s4, %s582_s15 }
  0x1b   : > { %p579_p6 = pnand %p577_p5, %p565_p3  ;;  %p585_p10 = scmp.lt.s32.totalorder %s583_s16, %s576_s7 }
  0x1d   : > { %p580_p7 = pneg %p579_p6  ;;  %p586_p13 = por %p585_p10, %p584_p4 }
  0x1f   : > { %p587_p12 = pnand %p586_p13, %p580_p7 }
  0x21   : > { %590 = shalt.err (!%p587_p12)
}
  0x22   : > { %496 = dma.hbm_to_vmem [thread:$0]  (!%p798_p0), %s147_s30, 256, %s150_s4, %s136_s6  }
  0x23   : > { %p816_p5 = pnand %p470_p1, %p175_p2  ;;  %s168_s28 = scalar_lea.hbm %s933_s1, %s479_s27 }
  0x24   : > { %s160_s29 = scalar_lea.vmem [#allocation5], %s464_s26  ;;  %s157_s7 = scalar_lea.sflag [#allocation6], %s789_s25 }
  0x25   : > { %s170_s3 = sshll.u32 %s160_s29, 4  ;;  %s706_s30 = smov [#allocation5]   ;;  %s171_s3 = int_to_ptr.vmem [resolvable:$true] %s170_s3 }
  0x26   : > { %s604_s8 = scalar_lea.vmem %s171_s3, 256  ;;  %s609_s4 = sshll.u32 %s706_s30, 4  ;;  %s610_s4 = int_to_ptr.vmem [resolvable:$false] %s609_s4 }
  0x27   : > { %p605_p12 = scmp.ne.s32.totalorder %s171_s3, %s604_s8  ;;  %s611_s6 = scalar_lea.vmem %s610_s4, 512 }
  0x28   : > { %p612_p1 = scmp.lt.s32.totalorder %s171_s3, %s610_s4  ;;  %p613_p2 = scmp.lt.s32.totalorder %s611_s6, %s604_s8 }
  0x29   : > { %p607_p6 = pnand %p605_p12, %p565_p3 }
  0x2a   : > { %p614_p4 = por %p613_p2, %p612_p1 }
  0x2b   : > { %p608_p7 = pneg %p607_p6 }
  0x2d   : > { %p615_p10 = pnand %p614_p4, %p608_p7 }
  0x2f   : > { %618 = shalt.err (!%p615_p10)
}
  0x30   : > { %499 = dma.hbm_to_vmem [thread:$0]  (!%p798_p0), %s168_s28, 256, %s171_s3, %s157_s7  }
  0x31   : > { %179 = sbr.rel (%p816_p5) target bundleno = 332 (0x14c), region = 28  ;;  %s832_s25 = sand.u32 (!%p816_p5), 1, %s687_s10  }
  0x32   : > { %s471_s26 = sshll.u32 (!%p816_p5), %s832_s25, 4  ;;  %s182_s27 = scalar_lea.sflag (!%p816_p5), [#allocation3], %s832_s25 }
  0x33   : > { %s185_s15 = scalar_lea.vmem (!%p816_p5), [#allocation2], %s471_s26 }
  0x36   : > { %670 = dma.done.wait (%p771_p8), %s182_s27, 256  }
  0x37   : > { %672 = vsyncadd (%p771_p8), %s182_s27, 4294967040  ;;  %s191_s5 = scalar_lea.sflag [#allocation6], %s832_s25  ;;  %s194_s16 = scalar_lea.vmem [#allocation5], %s471_s26 }
  0x38   : > { %674 = dma.done.wait (%p771_p8), %s191_s5, 256  }
  0x39   : > { %676 = vsyncadd (%p771_p8), %s191_s5, 4294967040  ;;  %s474_s18 = sshll.u32 %s695_s12, 3  ;;  %v227_v0 = vlaneseq  ;;  %v222_v6 = vld [vmem:[%s185_s15] sm:$0xff]  ;;  %v223_v7 = vld [vmem:[%s185_s15 + $0x8] sm:$0xff]  ;;  %v707_v15 = vmov 0.0   ;;  %s473_s21 = sshll.u32 %s832_s25, 3 }
  0x3a   : > { %v229_v1 = vstv %s474_s18  ;;  %v224_v8 = vld [vmem:[%s194_s16] sm:$0xff]  ;;  %v225_v9 = vld [vmem:[%s194_s16 + $0x8] sm:$0xff]  ;;  %v243_v11 = vmul.f32 0.5, %v222_v6  ;;  %v244_v12 = vmul.f32 0.5, %v223_v7  ;;  %s476_s28 = sshll.u32 %s695_s12, 7  ;;  %s219_s3 = scalar_lea.vmem [#allocation7], %s473_s21 }
  0x3b   : > { %v846_v2 = vshrl.u32 %v227_v0, 7  ;;  %v234_v3 = vand.u32 127, %v227_v0  ;;  %vm265_vm3 = vcmp.eq.f32.partialorder %v224_v8, 1.0  ;;  %vm266_vm4 = vcmp.eq.f32.partialorder %v225_v9, 1.0  ;;  %s352_s7 = sshll.u32 %s219_s3, 4  ;;  %s890_s4 = scalar_lea.hbm %s934_s2, %s476_s28  ;;  %s353_s7 = int_to_ptr.vmem [resolvable:$true] %s352_s7 }
  0x3c   : > { %555 = vtanh.f32 %v243_v11  ;;  %v285_v36 = vsub.f32 1.0, %v224_v8  ;;  %v286_v38 = vsub.f32 1.0, %v225_v9  ;;  %vm267_vm7 = vcmp.lt.f32.partialorder %v224_v8, 1.0  ;;  %s338_s12 = scalar_lea.sflag [#allocation4], %s832_s25  ;;  %s619_s6 = scalar_lea.vmem %s353_s7, 128 }
  0x3d   : > { %v849_v4 = vadd.s32 %v229_v1, %v846_v2  ;;  %v235_v5 = vadd.s32 128, %v234_v3  ;;  %557 = vtanh.f32 %v244_v12  ;;  %vm268_vm8 = vcmp.lt.f32.partialorder %v225_v9, 1.0  ;;  %p620_p8 = scmp.ne.s32.totalorder %s353_s7, %s619_s6  ;;  %s708_s26 = smov [#allocation7]  }
  0x3e   : > { %v287_v45 = vmul.f32 %v285_v36, %v285_v36  ;;  %v288_v48 = vmul.f32 %v286_v38, %v286_v38  ;;  %vm319_vm11 = vcmp.eq.s32.totalorder %v846_v2, 2  ;;  %vm308_vm12 = vcmp.eq.s32.totalorder %v846_v2, 1  ;;  %s623_s27 = sshll.u32 %s708_s26, 4  ;;  %s624_s27 = int_to_ptr.vmem [resolvable:$false] %s623_s27 }
  0x3f   : > { %vm231_vm0 = vcmp.lt.s32.totalorder %v849_v4, 10  ;;  %vm240_vm1 = vcmp.lt.s32.totalorder %v235_v5, 240  ;;  %vm297_vm13 = vcmp.eq.s32.totalorder %v846_v2, 0  ;;  %p621_p0 = pnand %p620_p8, %p775_p9  ;;  %s625_s15 = scalar_lea.vmem %s624_s27, 256 }
  0x40   : > { %vm854_vm2 = vmand %vm231_vm0, %vm240_vm1  ;;  %v289_v53 = vmul.f32 %v287_v45, %v287_v45  ;;  %v290_v55 = vmul.f32 %v288_v48, %v288_v48  ;;  %p626_p13 = scmp.lt.s32.totalorder %s353_s7, %s624_s27  ;;  %p627_p5 = scmp.lt.s32.totalorder %s625_s15, %s619_s6 }
  0x41   : > { %vm860_vm5 = vmand %vm265_vm3, %vm231_vm0  ;;  %p622_p3 = pneg %p621_p0 }
  0x42   : > { %vm866_vm6 = vmand %vm266_vm4, %vm854_vm2  ;;  %v295_v16 = vsel %vm860_vm5, 1.0, %v707_v15  ;;  %p628_p12 = por %p627_p5, %p626_p13 }
  0x43   : > { %v296_v17 = vsel %vm866_vm6, 1.0, %v707_v15  ;;  %vm271_vm9 = vmand %vm267_vm7, %vm231_vm0 }
  0x44   : > { %v320_v18 = vadd.f32 %v296_v17, %v295_v16  ;;  %vm272_vm10 = vmand %vm268_vm8, %vm854_vm2  ;;  %p629_p6 = pnand %p628_p12, %p622_p3 }
  0x46   : > { %321 = vadd.xlane.f32.xlu1 %v320_v18 }
  0x49   : > { %v556_v19 = vpop.eup %555 }
  0x4a   : > { %v558_v20 = vpop.eup %557  ;;  %v247_v21 = vmul.f32 0.5, %v556_v19 }
  0x4b   : > { %v248_v22 = vmul.f32 0.5, %v558_v20 }
  0x4c   : > { %v249_v23 = vadd.f32 0.5, %v247_v21 }
  0x4d   : > { %v250_v24 = vadd.f32 0.5, %v248_v22 }
  0x4e   : > { %v251_v25 = vmax.f32 %v249_v23, 0.0001 }
  0x4f   : > { %v252_v26 = vmax.f32 %v250_v24, 0.0001 }
  0x50   : > { %v253_v27 = vmin.f32 %v251_v25, 0.9999 }
  0x51   : > { %v254_v28 = vmin.f32 %v252_v26, 0.9999 }
  0x52   : > { %559 = vlog2.f32 %v253_v27  ;;  %v273_v29 = vsub.f32 1.0, %v253_v27 }
  0x53   : > { %561 = vlog2.f32 %v254_v28  ;;  %v274_v30 = vsub.f32 1.0, %v254_v28 }
  0x54   : > { %v275_v31 = vmul.f32 %v273_v29, %v273_v29 }
  0x55   : > { %v276_v33 = vmul.f32 %v274_v30, %v274_v30 }
  0x5f   : > { %v560_v32 = vpop.eup %559 }
  0x60   : > { %v562_v34 = vpop.eup %561  ;;  %v256_v35 = vmul.f32 0.6931472, %v560_v32 }
  0x61   : > { %v258_v37 = vmul.f32 0.6931472, %v562_v34 }
  0x62   : > { %v277_v39 = vmul.f32 %v275_v31, %v256_v35  ;;  %v259_v40 = vsub.f32 %v256_v35, %v222_v6 }
  0x63   : > { %v260_v41 = vsub.f32 %v258_v37, %v223_v7  ;;  %v278_v42 = vmul.f32 %v276_v33, %v258_v37 }
  0x64   : > { %v279_v43 = vsel %vm860_vm5, %v277_v39, 0.0  ;;  %v261_v44 = vmax.f32 %v259_v40, -9.2103405 }
  0x65   : > { %v262_v46 = vmax.f32 %v260_v41, -9.2103405  ;;  %v280_v47 = vsel %vm866_vm6, %v278_v42, 0.0 }
  0x66   : > { %v298_v49 = vadd.f32 %v280_v47, %v279_v43  ;;  %v263_v50 = vmin.f32 %v261_v44, -0.000100005 }
  0x67   : > { %v264_v51 = vmin.f32 %v262_v46, -0.000100005 }
  0x68   : > { %299 = vadd.xlane.f32.xlu0 %v298_v49  ;;  %v281_v52 = vmul.f32 %v263_v50, %v253_v27 }
  0x69   : > { %v282_v54 = vmul.f32 %v264_v51, %v254_v28 }
  0x6a   : > { %v283_v56 = vmul.f32 %v281_v52, %v253_v27 }
  0x6b   : > { %v284_v57 = vmul.f32 %v282_v54, %v254_v28 }
  0x6c   : > { %v291_v58 = vmul.f32 %v289_v53, %v283_v56 }
  0x6d   : > { %v292_v59 = vmul.f32 %v290_v55, %v284_v57 }
  0x6e   : > { %v293_v60 = vsel %vm271_vm9, %v291_v58, 0.0 }
  0x6f   : > { %v294_v61 = vsel %vm272_vm10, %v292_v59, 0.0 }
  0x70   : > { %v309_v62 = vadd.f32 %v294_v61, %v293_v60 }
  0x72   : > { %310 = vadd.xlane.f32.xlu0 %v309_v62 }
  0xcf   : > { %v322_v63 = vpop.xlane.xlu1 %321 }
  0xd0   : > { %v323_v3 = vrot.slane %v322_v63, 4 }
  0xd2   : > { %v324_v7 = vadd.f32 %v323_v3, %v322_v63 }
  0xd4   : > { %v325_v9 = vrot.slane %v324_v7, 2 }
  0xd6   : > { %v326_v14 = vadd.f32 %v325_v9, %v324_v7 }
  0xd8   : > { %v327_v17 = vrot.slane %v326_v14, 1 }
  0xda   : > { %v328_v20 = vadd.f32 %v327_v17, %v326_v14 }
  0xf1   : > { %v300_v0 = vpop.xlane.xlu0 %299 }
  0xf2   : > { %v301_v1 = vrot.slane %v300_v0, 4 }
  0xf4   : > { %v302_v5 = vadd.f32 %v301_v1, %v300_v0 }
  0xf6   : > { %v303_v6 = vrot.slane %v302_v5, 2 }
  0xf8   : > { %v304_v8 = vadd.f32 %v303_v6, %v302_v5 }
  0xfa   : > { %v305_v4 = vrot.slane %v304_v8, 1 }
  0xfb   : > { %v311_v11 = vpop.xlane.xlu0 %310 }
  0xfc   : > { %v312_v10 = vrot.slane %v311_v11, 4  ;;  %v306_v12 = vadd.f32 %v305_v4, %v304_v8 }
  0xfe   : > { %v313_v13 = vadd.f32 %v312_v10, %v311_v11  ;;  %481 = vpush %v306_v12 }
 0x100   : > { %v314_v15 = vrot.slane %v313_v13, 2 }
 0x102   : > { %v315_v16 = vadd.f32 %v314_v15, %v313_v13 }
 0x104   : > { %v316_v18 = vrot.slane %v315_v16, 1 }
 0x106   : > { %v317_v19 = vadd.f32 %v316_v18, %v315_v16 }
 0x108   : > { %483 = vpush %v317_v19 }
 0x109   : > { %485 = vpush %v328_v20 }
 0x12f   : > { %s482_s19 = spop %481 }
 0x130   : > { %v334_v24 = vstv %s482_s19 }
 0x139   : > { %s484_s20 = spop %483 }
 0x13a   : > { %v332_v21 = vstv %s484_s20  ;;  %s486_s29 = spop %485 }
 0x13b   : > { %v330_v22 = vstv %s486_s29 }
 0x13c   : > { %v331_v23 = vsel %vm319_vm11, %v330_v22, 0.0 }
 0x13d   : > { %v333_v25 = vsel %vm308_vm12, %v332_v21, %v331_v23 }
 0x13e   : > { %v335_v26 = vsel %vm297_vm13, %v334_v24, %v333_v25 }
 0x13f   : > { %336 = vst [vmem:[%s219_s3] sm:$0xff] %v335_v26 }
 0x140   : > { %632 = shalt.err (!%p629_p6)
}
 0x141   : > { %s633_s5 = scalar_lea.hbm %s890_s4, 128  ;;  %s637_s18 = scalar_lea.hbm %s934_s2, 256 }
 0x142   : > { %p634_p7 = scmp.ne.s32.totalorder %s890_s4, %s633_s5  ;;  %p638_p4 = scmp.lt.s32.totalorder %s890_s4, %s934_s2 }
 0x143   : > { %p639_p10 = scmp.lt.s32.totalorder %s637_s18, %s633_s5 }
 0x144   : > { %p635_p1 = pnand %p634_p7, %p775_p9 }
 0x145   : > { %p640_p8 = por %p639_p10, %p638_p4 }
 0x146   : > { %p636_p2 = pneg %p635_p1 }
 0x148   : > { %p641_p0 = pnand %p640_p8, %p636_p2 }
 0x14a   : > { %644 = shalt.err (!%p641_p0)
}
 0x14b   : > { %491 = dma.vmem_to_hbm [thread:$0]  (%p775_p9), %s353_s7, 128, %s890_s4, %s338_s12  }
 0x14c PF: > { %s364_s20 = sand.u32 1, %s683_s9   ;;  %p947_p3 = scmp.ge.s32.totalorder %s703_s14, 2 }
 0x14d   : > { %s365_s28 = scalar_lea.sflag [#allocation4], %s364_s20 }
 0x14e   : > { %p501_p13 = pnand %p947_p3, %p782_p11 }
 0x150   : > { %p502_p5 = pneg %p501_p13 }
 0x152   : > { %678 = dma.done.wait (%p502_p5), %s365_s28, 128  }
 0x153   : > { %680 = vsyncadd (%p502_p5), %s365_s28, 4294967168  ;;  %s21_s14 = sadd.s32 1, %s703_s14   ;;  %s948_s9 = smov %s687_s10 }
 0x154   : > { %p18_p12 = scmp.ge.s32.totalorder %s21_s14, 4   ;;  %s949_s10 = smov %s691_s11 }
 0x155   : > { %s950_s11 = smov %s780_s23  ;;  %s951_s12 = smov %s699_s13 }
 0x156   : > { %s952_s13 = smov %s954_s17  ;;  %20 = sbr.rel (!%p18_p12) target bundleno = 8 (0x8), region = 86 }
 0x15b   :  { %370 = vsyncpa [#allocation3], 1 }
 0x15c   :  { %372 = vsyncpa [#allocation3 + $0x1], 1 }
 0x15d   :  { %373 = vsyncpa [#allocation6], 1 }
 0x15e   :  { %375 = vsyncpa [#allocation6 + $0x1], 1 }
 0x15f   :  { %376 = vsyncpa [#allocation4], 1 }
 0x160   :  { %378 = vsyncpa [#allocation4 + $0x1], 1 }

</bundles_post_ra>
